<compile_context>
chip_gen: v5e
topology: v5e:2x2
jax: 0.10.0
libtpu: 0.0.40
codegen_flags: <defaults>
</compile_context>

<pallas_src>
import math
from functools import partial

import jax
import jax.numpy as jnp
from jax.experimental import pallas as pl
from jax.experimental.pallas import tpu as pltpu


# ----------------------------------------------------------------------------
# kernel
# ----------------------------------------------------------------------------

def _linear_embedding_kernel(x_ref, w_ref, b_ref, cls_ref, pos_ref, out_ref,
                             *, batch):
    """x_ref:  (B*(N+1), C) rows, class-token rows are all-zero
    w_ref:  (C, D)      linear weight (pre-transposed)
    b_ref:  (1, D)      linear bias
    cls_ref:(1, D)      class token
    pos_ref:(N+1, D)    position-embedding table
    out_ref:(B*(N+1), D)
    """
    # Single MXU matmul over all batches and tokens.  The class-token rows of
    # x are zero, so their matmul contribution is exactly zero and they are
    # produced entirely by the additive table below.
    proj = jnp.dot(x_ref[...], w_ref[...],
                   preferred_element_type=jnp.float32)            # (B*(N+1), D)

    # Per-token additive table: row 0 -> class token + pos[0];
    # rows 1..N -> linear bias + pos[n].  Built once from tiny params,
    # tiled over batch, added in one VPU pass.
    add = jnp.concatenate(
        [cls_ref[...] + pos_ref[:1, :],                           # (1, D)
         b_ref[...] + pos_ref[1:, :]],                            # (N, D)
        axis=0)                                                    # (N+1, D)

    out_ref[...] = (proj + jnp.tile(add, (batch, 1))).astype(out_ref.dtype)


# ----------------------------------------------------------------------------
# pallas_call wrapper
# ----------------------------------------------------------------------------

def linear_embedding(patch, params):
    """patch: (B, num_patches, in_channels) -> (B, num_patches + 1, projection_dim)."""
    B, N, C = patch.shape
    D = params['w'].shape[1]

    # Prepend one zero row per batch so the class-token slot falls out of the
    # same aligned matmul (zero contribution).  This removes every in-kernel
    # sublane-offset slice / multi-piece concat of the projected slab.
    x_pad = jnp.concatenate(
        [jnp.zeros((B, 1, C), jnp.float32), patch.astype(jnp.float32)], axis=1)
    x2d = x_pad.reshape(B * (N + 1), C)

    out2d = pl.pallas_call(
        partial(_linear_embedding_kernel, batch=B),
        out_shape=jax.ShapeDtypeStruct((B * (N + 1), D), jnp.float32),
        grid=(1,),
        in_specs=[
            pl.BlockSpec((B * (N + 1), C), lambda i: (0, 0)),
            pl.BlockSpec(params['w'].shape, lambda i: (0, 0)),
            pl.BlockSpec(params['b'].shape, lambda i: (0, 0)),
            pl.BlockSpec(params['cls'].shape, lambda i: (0, 0)),
            pl.BlockSpec(params['pos'].shape, lambda i: (0, 0)),
        ],
        out_specs=pl.BlockSpec((B * (N + 1), D), lambda i: (0, 0)),
        compiler_params=pltpu.CompilerParams(
            dimension_semantics=("arbitrary",)),
    )(x2d, params['w'], params['b'], params['cls'], params['pos'])

    return out2d.reshape(B, N + 1, D)


# ----------------------------------------------------------------------------
# parameter init (mirrors the PyTorch module) + pure-JAX reference
# ----------------------------------------------------------------------------

def init_linear_embedding_params(key, num_patches, in_channels, projection_dim):
    k_cls, k_w, k_b, k_pos = jax.random.split(key, 4)
    bound = 1.0 / math.sqrt(in_channels)        # torch.nn.Linear default init
    return dict(
        # nn.Linear weight stored pre-transposed so the kernel computes x @ W + b
        w=jax.random.uniform(k_w, (in_channels, projection_dim), jnp.float32,
                             -bound, bound),
        b=jax.random.uniform(k_b, (1, projection_dim), jnp.float32,
                             -bound, bound),
        cls=jax.random.normal(k_cls, (1, projection_dim), jnp.float32),
        pos=jax.random.normal(k_pos, (num_patches + 1, projection_dim),
                              jnp.float32),
    )


def linear_embedding_ref(patch, params):
    B, N, _ = patch.shape
    D = params['w'].shape[1]
    proj = jnp.einsum('bnc,cd->bnd', patch, params['w']) + params['b'][None]
    cls = jnp.broadcast_to(params['cls'][None], (B, 1, D))
    tokens = jnp.concatenate([cls, proj], axis=1)
    return tokens + params['pos'][None]


# ----------------------------------------------------------------------------
# demo / self-check
# ----------------------------------------------------------------------------

if __name__ == "__main__":
    key = jax.random.PRNGKey(0)

    # Shapes as used inside HSLT: per-region electrode embedding and the
    # region-level embedding.
    configs = [
        dict(batch=2, num_patches=4, in_channels=5, projection_dim=8),
        dict(batch=2, num_patches=9, in_channels=32, projection_dim=16),
    ]

    fwd = jax.jit(linear_embedding)
    for cfg in configs:
        key, k_x, k_p = jax.random.split(key, 3)
        x = jax.random.normal(
            k_x, (cfg['batch'], cfg['num_patches'], cfg['in_channels']),
            jnp.float32)
        params = init_linear_embedding_params(
            k_p, cfg['num_patches'], cfg['in_channels'], cfg['projection_dim'])

        out = jax.block_until_ready(fwd(x, params))
        ref = linear_embedding_ref(x, params)

        assert out.shape == (cfg['batch'], cfg['num_patches'] + 1,
                             cfg['projection_dim']), out.shape
        assert bool(jnp.all(jnp.isfinite(out)))
        assert bool(jnp.allclose(out, ref, atol=1e-5, rtol=1e-5)), \
            float(jnp.max(jnp.abs(out - ref)))

    print("KERNEL_OK")
</pallas_src>

<mosaic_0001>
module attributes {stable_mosaic.version = 11 : i64} {
  func.func @_linear_embedding_kernel(%arg0: i32, %arg1: memref<10x5xf32, #tpu.memory_space<vmem>>, %arg2: memref<5x8xf32, #tpu.memory_space<vmem>>, %arg3: memref<1x8xf32, #tpu.memory_space<vmem>>, %arg4: memref<1x8xf32, #tpu.memory_space<vmem>>, %arg5: memref<5x8xf32, #tpu.memory_space<vmem>>, %arg6: memref<10x8xf32, #tpu.memory_space<vmem>>) attributes {dimension_semantics = [#tpu.dimension_semantics<arbitrary>], iteration_bounds = array<i64: 1>, scalar_prefetch = 0 : i64, scratch_operands = 0 : i64, tpu.core_type = #tpu.core_type<tc>, window_params = [{pipeline_mode = #tpu.pipeline_mode<synchronous>, transform_indices = @transform_0, window_bounds = array<i64: 10, 5>}, {pipeline_mode = #tpu.pipeline_mode<synchronous>, transform_indices = @transform_1, window_bounds = array<i64: 5, 8>}, {pipeline_mode = #tpu.pipeline_mode<synchronous>, transform_indices = @transform_2, window_bounds = array<i64: 1, 8>}, {pipeline_mode = #tpu.pipeline_mode<synchronous>, transform_indices = @transform_3, window_bounds = array<i64: 1, 8>}, {pipeline_mode = #tpu.pipeline_mode<synchronous>, transform_indices = @transform_4, window_bounds = array<i64: 5, 8>}, {pipeline_mode = #tpu.pipeline_mode<synchronous>, transform_indices = @transform_5, window_bounds = array<i64: 10, 8>}]} {
    %c0 = arith.constant 0 : index
    %c0_0 = arith.constant 0 : index
    %0 = vector.load %arg1[%c0, %c0_0] : memref<10x5xf32, #tpu.memory_space<vmem>>, vector<10x5xf32>
    %c0_1 = arith.constant 0 : index
    %c0_2 = arith.constant 0 : index
    %1 = vector.load %arg2[%c0_1, %c0_2] : memref<5x8xf32, #tpu.memory_space<vmem>>, vector<5x8xf32>
    %cst = arith.constant dense<0.000000e+00> : vector<10x8xf32>
    %2 = tpu.matmul %0, %1, %cst {dimension_numbers = #tpu.dot_dimension_numbers<[1], [0], [0], [1], [0, 0, 1, 1], [], []>} : vector<10x5xf32>, vector<5x8xf32>, vector<10x8xf32> -> vector<10x8xf32>
    %c0_3 = arith.constant 0 : index
    %c0_4 = arith.constant 0 : index
    %3 = vector.load %arg4[%c0_3, %c0_4] : memref<1x8xf32, #tpu.memory_space<vmem>>, vector<1x8xf32>
    %c0_5 = arith.constant 0 : index
    %c0_6 = arith.constant 0 : index
    %4 = vector.load %arg5[%c0_5, %c0_6] : memref<5x8xf32, #tpu.memory_space<vmem>>, vector<1x8xf32>
    %5 = arith.addf %3, %4 : vector<1x8xf32>
    %c0_7 = arith.constant 0 : index
    %c0_8 = arith.constant 0 : index
    %6 = vector.load %arg3[%c0_7, %c0_8] : memref<1x8xf32, #tpu.memory_space<vmem>>, vector<1x8xf32>
    %c1 = arith.constant 1 : index
    %c0_9 = arith.constant 0 : index
    %7 = vector.load %arg5[%c1, %c0_9] : memref<5x8xf32, #tpu.memory_space<vmem>>, vector<4x8xf32>
    %8 = vector.broadcast %6 : vector<1x8xf32> to vector<4x8xf32>
    %9 = arith.addf %8, %7 : vector<4x8xf32>
    %10 = tpu.concatenate %5, %9 in 0 : vector<1x8xf32>, vector<4x8xf32> -> vector<5x8xf32>
    %11 = tpu.concatenate %10, %10 in 0 : vector<5x8xf32>, vector<5x8xf32> -> vector<10x8xf32>
    %12 = arith.addf %2, %11 : vector<10x8xf32>
    %c0_10 = arith.constant 0 : index
    %c0_11 = arith.constant 0 : index
    %13 = vector.load %arg6[%c0_10, %c0_11] : memref<10x8xf32, #tpu.memory_space<vmem>>, vector<10x8xf32>
    tpu.vector_store %arg6[%c0_10, %c0_11], %12 {strides = array<i32>} : memref<10x8xf32, #tpu.memory_space<vmem>>, vector<10x8xf32>,
    return
  }
  func.func @transform_0(%arg0: i32) -> (i32, i32) {
    %c0_i32 = arith.constant 0 : i32
    %c0_i32_0 = arith.constant 0 : i32
    %c0_i32_1 = arith.constant 0 : i32
    return %c0_i32, %c0_i32_0 : i32, i32
  }
  func.func @transform_1(%arg0: i32) -> (i32, i32) {
    %c0_i32 = arith.constant 0 : i32
    %c0_i32_0 = arith.constant 0 : i32
    %c0_i32_1 = arith.constant 0 : i32
    return %c0_i32, %c0_i32_0 : i32, i32
  }
  func.func @transform_2(%arg0: i32) -> (i32, i32) {
    %c0_i32 = arith.constant 0 : i32
    %c0_i32_0 = arith.constant 0 : i32
    %c0_i32_1 = arith.constant 0 : i32
    return %c0_i32, %c0_i32_0 : i32, i32
  }
  func.func @transform_3(%arg0: i32) -> (i32, i32) {
    %c0_i32 = arith.constant 0 : i32
    %c0_i32_0 = arith.constant 0 : i32
    %c0_i32_1 = arith.constant 0 : i32
    return %c0_i32, %c0_i32_0 : i32, i32
  }
  func.func @transform_4(%arg0: i32) -> (i32, i32) {
    %c0_i32 = arith.constant 0 : i32
    %c0_i32_0 = arith.constant 0 : i32
    %c0_i32_1 = arith.constant 0 : i32
    return %c0_i32, %c0_i32_0 : i32, i32
  }
  func.func @transform_5(%arg0: i32) -> (i32, i32) {
    %c0_i32 = arith.constant 0 : i32
    %c0_i32_0 = arith.constant 0 : i32
    %c0_i32_1 = arith.constant 0 : i32
    return %c0_i32, %c0_i32_0 : i32, i32
  }
}

</mosaic_0001>

<bundles_post_ra>
// kernel: linear_embedding.1
= control target key start
LH: loop header
LB: loop body
LE: loop exit
PB: predicated region body
PF: predicated region fallthrough
CT: control target
= control target key end

     0   :  { %vm40_vm0 = vcmask 1044480   ;;  %vm42_vm1 = vcmask 39936   ;;  %vm35_vm2 = vcmask 1040384   ;;  %vm75_vm3 = vcmask 64512   ;;  %s148_s1 = inlined_call_operand.vmem [shape: f32[5,8], index: 1, kind: input, shape index: {}]   ;;  %s149_s0 = inlined_call_operand.vmem [shape: f32[10,5], index: 0, kind: input, shape index: {}]   ;;  %s150_s2 = inlined_call_operand.vmem [shape: f32[1,8], index: 2, kind: input, shape index: {}]   ;;  %s151_s3 = inlined_call_operand.vmem [shape: f32[1,8], index: 3, kind: input, shape index: {}]   ;;  %s152_s4 = inlined_call_operand.vmem [shape: f32[5,8], index: 4, kind: input, shape index: {}]   ;;  %s153_s5 = inlined_call_operand.vmem [shape: f32[10,8], index: 5, kind: output, shape index: {}]  }
   0x1   :  { %v22_v0 = vld [vmem:[%s148_s1] sm:$0x1f]  ;;  %v21_v2 = vld [vmem:[%s149_s0 + $0x8] sm:$0x3]  ;;  %vm77_vm4 = vcmask 58368  }
   0x2   :  { %v20_v1 = vld [vmem:[%s149_s0] sm:$0xff]  ;;  %83 = vmatpush.msk.msra.mxu0 %vm40_vm0, %v22_v0  ;;  %86 = vmatpush.msk.msra.mxu1 %vm40_vm0, %v22_v0 }
   0x3   :  { %v23_v3 = vld [vmem:[%s151_s3] sm:$0x1]  ;;  %84 = vmatmul.msk.f32.vlgmr.msra.gmra.mxu0 %vm42_vm1, %v20_v1  ;;  %85 = vmatmul.msk.f32.vlgmr.msra.gmra.mxu1 %vm42_vm1, %v21_v2  ;;  %v27_v5 = vld [vmem:[%s152_s4 + $0x1] sm:$0xf] }
   0x4   :  { %v24_v4 = vld [vmem:[%s152_s4] sm:$0x1] }
   0x5   :  { %v87_v6 = vld [vmem:[%s150_s2] ss:$0 sm:$0xff]  ;;  %v25_v7 = vadd.f32 %v24_v4, %v23_v3 }
   0x6   :  { %v31_v8 = vadd.f32 %v87_v6, %v27_v5 }
   0x8   :  { %v33_v9 = vrot.slane %v31_v8, 7 }
   0xa   :  { %v36_v10 = vsel %vm35_vm2, %v25_v7, %v33_v9 }
   0xb   :  { %v38_v11 = vrot.slane %v36_v10, 3 }
   0xd   :  { %v41_v12 = vsel %vm40_vm0, %v36_v10, %v38_v11 }
  0x80   :  { %v69_v13 = vpop.f32.mrf.mxu0  ;;  %v72_v14 = vpop.f32.mrf.mxu1 }
  0x81   :  { %v70_v15 = vadd.f32 %v69_v13, %v41_v12  ;;  %v73_v16 = vadd.f32 %v72_v14, %v38_v11 }
  0x83   :  { %76 = vst.msk [vmem:[%s153_s5] sm:$0xff] %vm75_vm3, %v70_v15 }
  0x84   :  { %78 = vst.msk [vmem:[%s153_s5 + $0x8] sm:$0x3] %vm77_vm4, %v73_v16 }

</bundles_post_ra>
